<compile_context>
chip_gen: v7x
topology: tpu7x:2x2x1
jax: 0.10.0
libtpu: 0.0.40
codegen_flags: <defaults>
</compile_context>

<pallas_src>
import functools

import jax
import jax.numpy as jnp
from jax.experimental import pallas as pl
from jax.experimental.pallas import tpu as pltpu

NUM_EMBEDDINGS = 21        # MSAEncoder.num_embeddings
VOCAB_PAD = 32             # vocab padded 21 -> 32 (tokens fit in 5 bits / 1 byte)
MAX_PACK = 4               # tokens are byte-packed into one int32 word per row
DEFAULT_TILE_ROWS = 4096   # packed output rows per grid step (~2 MiB f32 out slab)


def _msa_encoder_kernel(words_ref, aux_ref, tab_ref, out_ref, *, levels: int):
    """words_ref: (T, 1) int32  — byte-packed tokens, one word per output row.
    aux_ref:   (2, K) int32  — row 0: per-lane byte shift, row 1: per-lane token id.
    tab_ref:   (levels, K, W) bfloat16 — block-diagonal fused table planes.
    out_ref:   (T, W) float32."""
    w = words_ref[...]                         # (T, 1) int32
    shift = aux_ref[0:1, :]                    # (1, K) int32
    low = aux_ref[1:2, :]                      # (1, K) int32

    # Selector one-hot over the packed vocab, single compare chain:
    #   oh[t, c] = 1  iff  byte (c // 32) of w[t] == c % 32
    vals = jnp.bitwise_and(jnp.right_shift(w, shift), VOCAB_PAD - 1)   # (T, K)
    oh = (vals == low).astype(jnp.bfloat16)                            # exact 0/1

    # Gather-as-matmul on the MXU: native bf16 passes with f32 accumulation.
    acc = jnp.dot(oh, tab_ref[0], preferred_element_type=jnp.float32)
    for j in range(1, levels):                 # static unroll, levels <= 3
        acc = acc + jnp.dot(oh, tab_ref[j], preferred_element_type=jnp.float32)
    out_ref[...] = acc


def _round_up(x: int, m: int) -> int:
    return -(-x // m) * m


def _fused_table(emb_table: jax.Array, strategy: str, d: int) -> jax.Array:
    """(VOCAB_PAD, D) f32 table such that out[tok] = table[tok] for this strategy."""
    base = jnp.zeros((NUM_EMBEDDINGS, d), jnp.float32)
    if strategy in ("emb", "emb_plus_one_hot"):
        base = base + emb_table.astype(jnp.float32)
    if strategy in ("one_hot", "emb_plus_one_hot"):
        base = base + jnp.eye(NUM_EMBEDDINGS, d, dtype=jnp.float32)
    # Pad vocab 21 -> 32 with zero rows (valid tokens never index them).
    return jnp.zeros((VOCAB_PAD, d), jnp.float32).at[:NUM_EMBEDDINGS].set(base)


def msa_encoder_forward(tokens: jax.Array,
                        emb_table: jax.Array,
                        strategy: str = "emb_plus_one_hot",
                        *,
                        tile_rows: int = DEFAULT_TILE_ROWS) -> jax.Array:
    """tokens: int array of any shape, values in [0, 21).
    emb_table: (21, embedding_dim) float32.
    Returns float32 array of shape tokens.shape + (embedding_dim,)."""
    assert strategy in ("one_hot", "emb", "emb_plus_one_hot")
    d = int(emb_table.shape[1])
    if strategy in ("one_hot", "emb_plus_one_hot"):
        # PyTorch's F.one_hot(tok, num_classes=d) requires d > max token.
        assert d >= NUM_EMBEDDINGS, "embedding_dim must be >= 21 for one-hot strategies"

    orig_shape = tokens.shape
    tok_flat = tokens.reshape(-1).astype(jnp.int32)
    n = int(tok_flat.shape[0])
    if n == 0:
        return jnp.zeros((*orig_shape, d), jnp.float32)

    # Pack `pack` consecutive tokens per output row so stores are lane-dense
    # (width a multiple of 128) whenever D divides 128.  Each row's tokens are
    # byte-packed into one int32 word (4 B/row of token HBM traffic).
    pack = min(MAX_PACK, 128 // d) if (d <= 128 and 128 % d == 0) else 1
    width = pack * d
    k_dim = pack * VOCAB_PAD

    # Equal-sized, 8-aligned tiles: tail padding < 8 rows per tile (not a full
    # tile); even tile count keeps the two v7x TensorCores balanced.
    rows = pl.cdiv(n, pack)
    num_tiles = max(1, pl.cdiv(rows, tile_rows))
    if num_tiles > 1 and num_tiles % 2 == 1:
        num_tiles += 1
    tile = _round_up(pl.cdiv(rows, num_tiles), 8)
    rows_pad = num_tiles * tile

    n_pad = rows_pad * pack
    if n_pad != n:
        tok_flat = jnp.pad(tok_flat, (0, n_pad - n))   # pad tokens hit row 0; sliced off below
    tok2d = tok_flat.reshape(rows_pad, pack)
    byte_shift = (8 * jnp.arange(pack, dtype=jnp.int32))[None, :]
    words = jnp.sum(tok2d << byte_shift, axis=1, dtype=jnp.int32).reshape(rows_pad, 1)

    # Per-lane constants (VMEM-resident; avoids rebuilding iota-derived values
    # on the VPU every grid step).
    c = jnp.arange(k_dim, dtype=jnp.int32)
    aux = jnp.stack([8 * (c // VOCAB_PAD), c % VOCAB_PAD])          # (2, K) int32

    # Block-diagonal fused table, split into bf16 hi + residual planes so every
    # MXU pass is native bf16 (the emulated f32 dot was the binding unit on v5e).
    fused = _fused_table(emb_table, strategy, d)
    big = jnp.zeros((k_dim, width), jnp.float32)
    for p in range(pack):
        big = big.at[p * VOCAB_PAD:(p + 1) * VOCAB_PAD,
                     p * d:(p + 1) * d].set(fused)
    levels = 1 if strategy == "one_hot" else 3       # one_hot table is exact in bf16
    planes = []
    resid = big
    for _ in range(levels):
        plane = resid.astype(jnp.bfloat16)
        planes.append(plane)
        resid = resid - plane.astype(jnp.float32)
    tab = jnp.stack(planes)                          # (levels, K, W) bf16

    # Explicit scoped-VMEM headroom (needed vs v5e's 16 MiB default); clamp to
    # a fraction of physical VMEM so the request is always legal (v7x: 64 MiB).
    vmem_limit = 48 * 1024 * 1024
    try:
        cap = int(pltpu.get_tpu_info().vmem_capacity_bytes)
        vmem_limit = min(vmem_limit, (cap * 3) // 4)
    except Exception:
        pass

    out = pl.pallas_call(
        functools.partial(_msa_encoder_kernel, levels=levels),
        out_shape=jax.ShapeDtypeStruct((rows_pad, width), jnp.float32),
        grid=(num_tiles,),
        in_specs=[
            pl.BlockSpec((tile, 1), lambda i: (i, 0)),                   # packed tokens (tiled)
            pl.BlockSpec((2, k_dim), lambda i: (0, 0)),                  # lane constants (resident)
            pl.BlockSpec((levels, k_dim, width), lambda i: (0, 0, 0)),   # fused table planes (resident)
        ],
        out_specs=pl.BlockSpec((tile, width), lambda i: (i, 0)),
        compiler_params=pltpu.CompilerParams(
            dimension_semantics=("parallel",),
            vmem_limit_bytes=vmem_limit),
    )(words, aux, tab)

    # Free row-major un-packing: (rows_pad, pack*D) -> (rows_pad*pack, D).
    out_flat = out.reshape(rows_pad * pack, d)[:n]
    return out_flat.reshape(*orig_shape, d)


def _reference(tokens, emb_table, strategy, d):
    tok = tokens.astype(jnp.int32)
    if strategy == "one_hot":
        return jax.nn.one_hot(tok, d, dtype=jnp.float32)
    emb = emb_table[tok].astype(jnp.float32)
    if strategy == "emb":
        return emb
    return emb + jax.nn.one_hot(tok, d, dtype=jnp.float32)


if __name__ == "__main__":
    embedding_dim = 32      # must be >= 21 for the one-hot strategies
    batch, seq = 2, 8

    key = jax.random.PRNGKey(0)
    k_tok, k_emb = jax.random.split(key)

    # Deterministic parameter init (nn.Embedding default: N(0, 1)).
    emb_table = jax.random.normal(k_emb, (NUM_EMBEDDINGS, embedding_dim),
                                  dtype=jnp.float32)
    tokens = jax.random.randint(k_tok, (batch, seq), 0, NUM_EMBEDDINGS,
                                dtype=jnp.int32)

    for strat in ("emb_plus_one_hot", "emb", "one_hot"):
        out = msa_encoder_forward(tokens, emb_table, strategy=strat)
        out = jax.block_until_ready(out)
        ref = _reference(tokens, emb_table, strat, embedding_dim)
        assert out.shape == (batch, seq, embedding_dim), (strat, out.shape)
        assert out.dtype == jnp.float32
        assert jnp.allclose(out, ref, atol=1e-5, rtol=1e-5), strat

    print("KERNEL_OK")
</pallas_src>

<mosaic_0001>
module attributes {stable_mosaic.version = 11 : i64} {
  func.func @_msa_encoder_kernel(%arg0: i32, %arg1: memref<8x1xi32, #tpu.memory_space<vmem>>, %arg2: memref<2x128xi32, #tpu.memory_space<vmem>>, %arg3: memref<3x128x128xbf16, #tpu.memory_space<vmem>>, %arg4: memref<8x128xf32, #tpu.memory_space<vmem>>) attributes {dimension_semantics = [#tpu.dimension_semantics<parallel>], iteration_bounds = array<i64: 1>, scalar_prefetch = 0 : i64, scratch_operands = 0 : i64, tpu.core_type = #tpu.core_type<tc>, window_params = [{transform_indices = @transform_0, window_bounds = array<i64: 8, 1>}, {pipeline_mode = #tpu.pipeline_mode<synchronous>, transform_indices = @transform_1, window_bounds = array<i64: 2, 128>}, {pipeline_mode = #tpu.pipeline_mode<synchronous>, transform_indices = @transform_2, window_bounds = array<i64: 3, 128, 128>}, {transform_indices = @transform_3, window_bounds = array<i64: 8, 128>}]} {
    %c0 = arith.constant 0 : index
    %c0_0 = arith.constant 0 : index
    %0 = vector.load %arg1[%c0, %c0_0] : memref<8x1xi32, #tpu.memory_space<vmem>>, vector<8x1xi32>
    %c0_1 = arith.constant 0 : index
    %c0_2 = arith.constant 0 : index
    %1 = vector.load %arg2[%c0_1, %c0_2] : memref<2x128xi32, #tpu.memory_space<vmem>>, vector<1x128xi32>
    %c1 = arith.constant 1 : index
    %c0_3 = arith.constant 0 : index
    %2 = vector.load %arg2[%c1, %c0_3] : memref<2x128xi32, #tpu.memory_space<vmem>>, vector<1x128xi32>
    %3 = vector.broadcast %0 : vector<8x1xi32> to vector<8x128xi32>
    %4 = vector.broadcast %1 : vector<1x128xi32> to vector<8x128xi32>
    %5 = arith.shrsi %3, %4 : vector<8x128xi32>
    %c31_i32 = arith.constant 31 : i32
    %6 = vector.broadcast %c31_i32 : i32 to vector<8x128xi32>
    %7 = arith.andi %5, %6 : vector<8x128xi32>
    %8 = vector.broadcast %2 : vector<1x128xi32> to vector<8x128xi32>
    %9 = arith.cmpi eq, %7, %8 : vector<8x128xi32>
    %10 = arith.extui %9 : vector<8x128xi1> to vector<8x128xi32>
    %11 = arith.sitofp %10 : vector<8x128xi32> to vector<8x128xf32>
    %12 = arith.truncf %11 : vector<8x128xf32> to vector<8x128xbf16>
    %c0_4 = arith.constant 0 : index
    %c0_5 = arith.constant 0 : index
    %c0_6 = arith.constant 0 : index
    %13 = vector.load %arg3[%c0_4, %c0_5, %c0_6] : memref<3x128x128xbf16, #tpu.memory_space<vmem>>, vector<1x128x128xbf16>
    %14 = vector.shape_cast %13 : vector<1x128x128xbf16> to vector<128x128xbf16>
    %cst = arith.constant dense<0.000000e+00> : vector<8x128xf32>
    %15 = tpu.matmul %12, %14, %cst {dimension_numbers = #tpu.dot_dimension_numbers<[1], [0], [0], [1], [0, 0, 1, 1], [], []>} : vector<8x128xbf16>, vector<128x128xbf16>, vector<8x128xf32> -> vector<8x128xf32>
    %c1_7 = arith.constant 1 : index
    %c0_8 = arith.constant 0 : index
    %c0_9 = arith.constant 0 : index
    %16 = vector.load %arg3[%c1_7, %c0_8, %c0_9] : memref<3x128x128xbf16, #tpu.memory_space<vmem>>, vector<1x128x128xbf16>
    %17 = vector.shape_cast %16 : vector<1x128x128xbf16> to vector<128x128xbf16>
    %cst_10 = arith.constant dense<0.000000e+00> : vector<8x128xf32>
    %18 = tpu.matmul %12, %17, %cst_10 {dimension_numbers = #tpu.dot_dimension_numbers<[1], [0], [0], [1], [0, 0, 1, 1], [], []>} : vector<8x128xbf16>, vector<128x128xbf16>, vector<8x128xf32> -> vector<8x128xf32>
    %19 = arith.addf %15, %18 : vector<8x128xf32>
    %c2 = arith.constant 2 : index
    %c0_11 = arith.constant 0 : index
    %c0_12 = arith.constant 0 : index
    %20 = vector.load %arg3[%c2, %c0_11, %c0_12] : memref<3x128x128xbf16, #tpu.memory_space<vmem>>, vector<1x128x128xbf16>
    %21 = vector.shape_cast %20 : vector<1x128x128xbf16> to vector<128x128xbf16>
    %cst_13 = arith.constant dense<0.000000e+00> : vector<8x128xf32>
    %22 = tpu.matmul %12, %21, %cst_13 {dimension_numbers = #tpu.dot_dimension_numbers<[1], [0], [0], [1], [0, 0, 1, 1], [], []>} : vector<8x128xbf16>, vector<128x128xbf16>, vector<8x128xf32> -> vector<8x128xf32>
    %23 = arith.addf %19, %22 : vector<8x128xf32>
    %c0_14 = arith.constant 0 : index
    %c0_15 = arith.constant 0 : index
    %24 = vector.load %arg4[%c0_14, %c0_15] : memref<8x128xf32, #tpu.memory_space<vmem>>, vector<8x128xf32>
    tpu.vector_store %arg4[%c0_14, %c0_15], %23 {strides = array<i32>} : memref<8x128xf32, #tpu.memory_space<vmem>>, vector<8x128xf32>,
    return
  }
  func.func @transform_0(%arg0: i32) -> (i32, i32) {
    %c0_i32 = arith.constant 0 : i32
    %c0_i32_0 = arith.constant 0 : i32
    return %arg0, %c0_i32 : i32, i32
  }
  func.func @transform_1(%arg0: i32) -> (i32, i32) {
    %c0_i32 = arith.constant 0 : i32
    %c0_i32_0 = arith.constant 0 : i32
    %c0_i32_1 = arith.constant 0 : i32
    return %c0_i32, %c0_i32_0 : i32, i32
  }
  func.func @transform_2(%arg0: i32) -> (i32, i32, i32) {
    %c0_i32 = arith.constant 0 : i32
    %c0_i32_0 = arith.constant 0 : i32
    %c0_i32_1 = arith.constant 0 : i32
    %c0_i32_2 = arith.constant 0 : i32
    return %c0_i32, %c0_i32_0, %c0_i32_1 : i32, i32, i32
  }
  func.func @transform_3(%arg0: i32) -> (i32, i32) {
    %c0_i32 = arith.constant 0 : i32
    %c0_i32_0 = arith.constant 0 : i32
    return %arg0, %c0_i32 : i32, i32
  }
}

</mosaic_0001>

<bundles_post_ra>
// kernel: tpu_custom_call.1
= control target key start
LH: loop header
LB: loop body
LE: loop exit
PB: predicated region body
PF: predicated region fallthrough
CT: control target
= control target key end

     0   :  { %8 = vsyncpa [#allocation3], 0  ;;  %s688_s0 = inlined_call_operand.vmem [shape: s32[8,1], index: 0, kind: input, shape index: {}]   ;;  %s689_s1 = inlined_call_operand.vmem [shape: s32[2,128], index: 1, kind: input, shape index: {}]   ;;  %s690_s2 = inlined_call_operand.hbm [shape: bf16[3,128,128], index: 2, kind: input, shape index: {}]   ;;  %s691_s3 = inlined_call_operand.hbm [shape: f32[8,128], index: 3, kind: output, shape index: {}]  }
   0x1   :  { %9 = vsyncpa [#allocation4], 0  ;;  %s587_s12 = smov [#allocation2]   ;;  %s539_s16 = scalar_lea.hbm %s690_s2, 3072 }
   0x2   :  { %s19_s13 = sshll.u32 %s587_s12, 4  ;;  %p540_p0 = scmp.ne.s32.totalorder %s690_s2, %s539_s16  ;;  %s20_s13 = int_to_ptr.vmem [resolvable:$true] %s19_s13 }
   0x3   :  { %p543_p1 = scmp.lt.u32.totalorder %s539_s16, %s690_s2 }
   0x5   :  { %p545_p2 = pnand %p543_p1, %p540_p0 }
   0x7   :  { %548 = shalt.err (!%p545_p2)
}
   0x8   :  { %s549_s21 = scalar_lea.vmem %s20_s13, 3072  ;;  %p554_p4 = scmp.lt.s32.totalorder %s20_s13, %s20_s13 }
   0x9   :  { %p550_p3 = scmp.ne.s32.totalorder %s20_s13, %s549_s21  ;;  %p555_p5 = scmp.lt.s32.totalorder %s549_s21, %s549_s21 }
   0xb   :  { %p556_p6 = por %p555_p5, %p554_p4 }
   0xd   :  { %p557_p7 = pnand %p556_p6, %p550_p3 }
   0xf   :  { %560 = shalt.err (!%p557_p7)
}
  0x10   :  { %s588_s22 = smov 64   ;;  %s589_s23 = smov 4  }
  0x11   :  { %25 = dma.hbm_to_vmem [thread:$0]  %s690_s2, 3072, %s20_s13, [#allocation3], %s588_s22, %s588_s22, %s589_s23  }
  0x12   :  { %583 = dma.done.wait [#allocation3], 3072  }
  0x13   :  { %584 = vsyncadd [#allocation3], 4294964224  ;;  %v590_v0 = vmov 0   ;;  %v591_v1 = vmov 0.0   ;;  %v30_v2 = vld [vmem:[%s688_s0] sm:$0xff]  ;;  %v515_v3 = vld [vmem:[#allocation2] sm:$0xff]  }
  0x14   :  { %514 = vset.pattern.permute.xlu0 %v590_v0  ;;  %461 = vmatprep.subr.bf16.mxu0 %v591_v1  ;;  %v516_v4 = vld [vmem:[#allocation2 + $0x40] sm:$0xff]   ;;  %v517_v5 = vld [vmem:[#allocation2 + $0x8] sm:$0xff]   ;;  %vm592_vm0 = vmmov 0   ;;  %v519_v7 = vld [vmem:[#allocation2 + $0x10] sm:$0xff]   ;;  %v593_v26 = vmov 1.0|1.0  }
  0x15   :  { %441 = vmatprep.subr.bf16.mxu1 %v591_v1  ;;  %34 = vperm.xlu0 %514, %v30_v2   ;;  %v518_v6 = vld [vmem:[#allocation2 + $0x48] sm:$0xff]   ;;  %v520_v8 = vld [vmem:[#allocation2 + $0x50] sm:$0xff]   ;;  %v521_v9 = vld [vmem:[#allocation2 + $0x18] sm:$0xff]  }
  0x16   :  { %462 = vmatpush3.bf16.msra.mxu0 %v515_v3  ;;  %442 = vmatpush3.bf16.msra.mxu1 %v516_v4  ;;  %v522_v10 = vld [vmem:[#allocation2 + $0x58] sm:$0xff]   ;;  %v523_v11 = vld [vmem:[#allocation2 + $0x20] sm:$0xff]   ;;  %v525_v13 = vld [vmem:[#allocation2 + $0x28] sm:$0xff]  }
  0x17   :  { %463 = vmatprep.subr.bf16.mxu0 %v591_v1  ;;  %443 = vmatprep.subr.bf16.mxu1 %v591_v1  ;;  %v524_v12 = vld [vmem:[#allocation2 + $0x60] sm:$0xff]   ;;  %v526_v14 = vld [vmem:[#allocation2 + $0x68] sm:$0xff]   ;;  %v527_v15 = vld [vmem:[#allocation2 + $0x30] sm:$0xff]  }
  0x18   :  { %457 = vmatprep.mubr.msk.bf16.mxu1 %vm592_vm0, %v591_v1  ;;  %477 = vmatprep.mubr.msk.bf16.mxu0 %vm592_vm0, %v591_v1  ;;  %v528_v16 = vld [vmem:[#allocation2 + $0x70] sm:$0xff]   ;;  %v529_v17 = vld [vmem:[#allocation2 + $0x38] sm:$0xff]   ;;  %v531_v24 = vld [vmem:[#allocation2 + $0x80] sm:$0xff]  }
  0x19   :  { %v530_v18 = vld [vmem:[#allocation2 + $0x78] sm:$0xff]   ;;  %v381_v19 = vld [vmem:[%s689_s1] ss:$0 sm:$0xff]  ;;  %v382_v22 = vld [vmem:[%s689_s1 + $0x1] ss:$0 sm:$0xff]  ;;  %s594_s1 = smov [#allocation5]  }
  0x1a   :  { %464 = vmatpush3.bf16.msra.mxu0 %v517_v5  ;;  %444 = vmatpush3.bf16.msra.mxu1 %v518_v6  ;;  %v532_v27 = vld [vmem:[#allocation2 + $0x88] sm:$0xff]   ;;  %v533_v28 = vld [vmem:[#allocation2 + $0x90] sm:$0xff]   ;;  %v534_v29 = vld [vmem:[#allocation2 + $0x98] sm:$0xff]   ;;  %s372_s30 = sshll.u32 %s594_s1, 4  ;;  %s373_s30 = int_to_ptr.vmem [resolvable:$true] %s372_s30 }
  0x1b   :  { %465 = vmatprep.subr.bf16.mxu0 %v591_v1  ;;  %445 = vmatprep.subr.bf16.mxu1 %v591_v1  ;;  %v535_v30 = vld [vmem:[#allocation2 + $0xa0] sm:$0xff]   ;;  %v536_v31 = vld [vmem:[#allocation2 + $0xa8] sm:$0xff]   ;;  %v537_v32 = vld [vmem:[#allocation2 + $0xb0] sm:$0xff]   ;;  %s561_s4 = scalar_lea.vmem %s373_s30, 128  ;;  %p566_p9 = scmp.lt.s32.totalorder %s373_s30, %s373_s30 }
  0x1c   :  { %v538_v33 = vld [vmem:[#allocation2 + $0xb8] sm:$0xff]   ;;  %p562_p8 = scmp.ne.s32.totalorder %s373_s30, %s561_s4  ;;  %p567_p10 = scmp.lt.s32.totalorder %s561_s4, %s561_s4 }
  0x1e   :  { %466 = vmatpush3.bf16.msra.mxu0 %v519_v7  ;;  %446 = vmatpush3.bf16.msra.mxu1 %v520_v8  ;;  %p568_p11 = por %p567_p10, %p566_p9 }
  0x1f   :  { %467 = vmatprep.subr.bf16.mxu0 %v591_v1  ;;  %447 = vmatprep.subr.bf16.mxu1 %v591_v1 }
  0x20   :  { %p569_p12 = pnand %p568_p11, %p562_p8 }
  0x22   :  { %468 = vmatpush3.bf16.msra.mxu0 %v521_v9  ;;  %448 = vmatpush3.bf16.msra.mxu1 %v522_v10 }
  0x23   :  { %469 = vmatprep.subr.bf16.mxu0 %v591_v1  ;;  %449 = vmatprep.subr.bf16.mxu1 %v591_v1 }
  0x26   :  { %470 = vmatpush3.bf16.msra.mxu0 %v523_v11  ;;  %450 = vmatpush3.bf16.msra.mxu1 %v524_v12 }
  0x27   :  { %471 = vmatprep.subr.bf16.mxu0 %v591_v1  ;;  %451 = vmatprep.subr.bf16.mxu1 %v591_v1 }
  0x2a   :  { %472 = vmatpush3.bf16.msra.mxu0 %v525_v13  ;;  %452 = vmatpush3.bf16.msra.mxu1 %v526_v14 }
  0x2b   :  { %473 = vmatprep.subr.bf16.mxu0 %v591_v1  ;;  %453 = vmatprep.subr.bf16.mxu1 %v591_v1 }
  0x2e   :  { %474 = vmatpush3.bf16.msra.mxu0 %v527_v15  ;;  %454 = vmatpush3.bf16.msra.mxu1 %v528_v16 }
  0x2f   :  { %475 = vmatprep.subr.bf16.mxu0 %v591_v1  ;;  %455 = vmatprep.subr.bf16.mxu1 %v591_v1 }
  0x32   :  { %476 = vmatpush3.bf16.msra.mxu0 %v529_v17  ;;  %456 = vmatpush3.bf16.msra.mxu1 %v530_v18 }
  0x33   :  { %481 = vmatprep.subr.bf16.mxu0 %v591_v1 }
  0x94   :  { %v35_v20 = vpop.permute.xlu0 %34 }
  0x95   :  { %v40_v21 = vshra.s32 %v35_v20, %v381_v19 }
  0x97   :  { %v41_v23 = vand.u32 31, %v40_v21 }
  0x99   :  { %vm46_vm1 = vcmp.eq.s32.totalorder %v41_v23, %v382_v22 }
  0x9a   :  { %vm657_vm2 = vmpackc.low %vm46_vm1, %vm46_vm1 }
  0x9b   :  { %458 = vmatmul.mubr.msk.bf16.vlgmr.msra.gmra.mrb[0].mxu1 %vm657_vm2, %v593_v26  ;;  %478 = vmatmul.mubr.msk.bf16.vlgmr.msra.gmra.mrb[0].mxu0 %vm657_vm2, %v593_v26 }
  0x9c   :  { %482 = vmatpush3.bf16.msra.mxu0 %v531_v24  ;;  %497 = vmatprep.mubr.msk.bf16.mxu0 %vm592_vm0, %v591_v1 }
  0x9d   :  { %483 = vmatprep.subr.bf16.mxu0 %v591_v1 }
  0xa0   :  { %484 = vmatpush3.bf16.msra.mxu0 %v532_v27 }
  0xa1   :  { %485 = vmatprep.subr.bf16.mxu0 %v591_v1 }
  0xa4   :  { %486 = vmatpush3.bf16.msra.mxu0 %v533_v28 }
  0xa5   :  { %487 = vmatprep.subr.bf16.mxu0 %v591_v1 }
  0xa8   :  { %488 = vmatpush3.bf16.msra.mxu0 %v534_v29 }
  0xa9   :  { %489 = vmatprep.subr.bf16.mxu0 %v591_v1 }
  0xac   :  { %490 = vmatpush3.bf16.msra.mxu0 %v535_v30 }
  0xad   :  { %491 = vmatprep.subr.bf16.mxu0 %v591_v1 }
  0xb0   :  { %492 = vmatpush3.bf16.msra.mxu0 %v536_v31 }
  0xb1   :  { %493 = vmatprep.subr.bf16.mxu0 %v591_v1 }
  0xb4   :  { %494 = vmatpush3.bf16.msra.mxu0 %v537_v32 }
  0xb5   :  { %495 = vmatprep.subr.bf16.mxu0 %v591_v1 }
  0xb8   :  { %496 = vmatpush3.bf16.msra.mxu0 %v538_v33 }
  0xbb   :  { %498 = vmatmul.mubr.msk.bf16.vlgmr.msra.gmra.mrb[0].mxu0 %vm657_vm2, %v593_v26 }
 0x16e   :  { %v165_v34 = vpop.f32.mrb[0].mxu1 }
 0x16f   :  { %v459_v35 = vpop.f32.mrb[1].mxu1 }
 0x170   :  { %v168_v36 = vpop.f32.mrb[2].mxu1 }
 0x171   :  { %v460_v37 = vpop.f32.mrb[3].mxu1 }
 0x18e   :  { %v358_v38 = vpop.f32.mrb[0].mxu0 }
 0x18f   :  { %v501_v39 = vadd.f32 %v358_v38, %v165_v34  ;;  %v499_v40 = vpop.f32.mrb[1].mxu0 }
 0x190   :  { %v361_v41 = vpop.f32.mrb[2].mxu0 }
 0x191   :  { %365 = vst [vmem:[#allocation5] sm:$0xff] %v501_v39  ;;  %v500_v42 = vpop.f32.mrb[3].mxu0 }
 0x192   :  { %572 = shalt.err (!%p569_p12)
}
 0x193   :  { %s573_s7 = scalar_lea.hbm %s691_s3, 128 }
 0x194   :  { %p574_p13 = scmp.ne.s32.totalorder %s691_s3, %s573_s7  ;;  %p577_p0 = scmp.lt.u32.totalorder %s573_s7, %s691_s3 }
 0x196   :  { %p579_p1 = pnand %p577_p0, %p574_p13 }
 0x198   :  { %582 = shalt.err (!%p579_p1)
}
 0x199   :  { %375 = dma.vmem_to_hbm [thread:$0]  %s373_s30, 128, %s691_s3, [#allocation4]  }
 0x19a   :  { %585 = dma.done.wait [#allocation4], 128  }
 0x19b   :  { %586 = vsyncadd [#allocation4], 4294967168 }
 0x19c   :  { %379 = vsyncpa [#allocation3], 1 }
 0x19d   :  { %380 = vsyncpa [#allocation4], 1 }

</bundles_post_ra>
